<compile_context>
chip_gen: v6e
topology: v6e:2x2x1
jax: 0.10.0
libtpu: 0.0.40
codegen_flags: <defaults>
</compile_context>

<pallas_src>
import jax
import jax.numpy as jnp
from jax.experimental import pallas as pl
from jax.experimental.pallas import tpu as pltpu


def _identity_kernel(x_ref, o_ref):
    # Whole-tile copy: one vld / vst stream per block, no compute.
    o_ref[...] = x_ref[...]


def noop_forward(x):
    """Forward pass of the PyTorch `NoOp` module (identity) via one pallas_call."""
    orig_shape = x.shape
    flat = x.reshape(-1)
    n = flat.shape[0]

    LANE = 128
    if n % LANE == 0:
        # Lane-dense slab: last dim exactly 128 -> unmasked vector loads/stores.
        slab = flat.reshape(n // LANE, LANE)
    else:
        # Fall back to a single full-extent block (full-array blocks are exempt
        # from the (8,128) divisibility constraint).
        slab = flat.reshape(1, n)

    rows, cols = slab.shape
    TILE_ROWS = 2048  # 2048 * 128 * 4B = 1 MiB per f32 block; double-buffered ~2 MiB.

    if rows <= TILE_ROWS:
        # Small case (the one exercised below): single invocation, no grid,
        # whole array resident in VMEM for the copy.
        out = pl.pallas_call(
            _identity_kernel,
            out_shape=jax.ShapeDtypeStruct(slab.shape, slab.dtype),
            in_specs=[pl.BlockSpec(slab.shape, lambda: (0, 0))],
            out_specs=pl.BlockSpec(slab.shape, lambda: (0, 0)),
            input_output_aliases={0: 0},
        )(slab)
    else:
        # Large case: tile rows so each block stays well under the scoped VMEM
        # limit on every generation (incl. v7x's 64 MiB), with pipelined DMA.
        grid = (pl.cdiv(rows, TILE_ROWS),)
        out = pl.pallas_call(
            _identity_kernel,
            out_shape=jax.ShapeDtypeStruct(slab.shape, slab.dtype),
            grid=grid,
            in_specs=[pl.BlockSpec((TILE_ROWS, cols), lambda i: (i, 0))],
            out_specs=pl.BlockSpec((TILE_ROWS, cols), lambda i: (i, 0)),
            input_output_aliases={0: 0},
            compiler_params=pltpu.CompilerParams(
                dimension_semantics=("parallel",)),
        )(slab)

    return out.reshape(orig_shape)


if __name__ == "__main__":
    key = jax.random.PRNGKey(0)
    x = jax.random.normal(key, (2, 4, 16, 16), jnp.float32)

    x_host = jax.device_get(x)           # keep a reference copy for the check

    out = noop_forward(x)
    out = jax.block_until_ready(out)

    assert out.shape == x.shape and out.dtype == x.dtype
    assert jnp.array_equal(out, jnp.asarray(x_host)), "NoOp output != input"

    print("KERNEL_OK")
</pallas_src>

<mosaic_0001>
module attributes {stable_mosaic.version = 11 : i64} {
  func.func @_identity_kernel(%arg0: memref<16x128xf32, #tpu.memory_space<vmem>>, %arg1: memref<16x128xf32, #tpu.memory_space<vmem>>) attributes {dimension_semantics = [], scalar_prefetch = 0 : i64, scratch_operands = 0 : i64, tpu.core_type = #tpu.core_type<tc>} {
    %c0 = arith.constant 0 : index
    %c0_0 = arith.constant 0 : index
    %0 = vector.load %arg0[%c0, %c0_0] : memref<16x128xf32, #tpu.memory_space<vmem>>, vector<16x128xf32>
    %c0_1 = arith.constant 0 : index
    %c0_2 = arith.constant 0 : index
    %1 = vector.load %arg1[%c0_1, %c0_2] : memref<16x128xf32, #tpu.memory_space<vmem>>, vector<16x128xf32>
    tpu.vector_store %arg1[%c0_1, %c0_2], %0 {strides = array<i32>} : memref<16x128xf32, #tpu.memory_space<vmem>>, vector<16x128xf32>,
    return
  }
}

</mosaic_0001>

<bundles_post_ra>
// kernel: tpu_custom_call.1
= control target key start
LH: loop header
LB: loop body
LE: loop exit
PB: predicated region body
PF: predicated region fallthrough
CT: control target
= control target key end

     0   :  { %6 = vsyncpa [#allocation3], 0  ;;  %s112_s0 = inlined_call_operand.hbm [shape: f32[16,128], index: 0, kind: input, shape index: {}, may-alias: {0,1}]   ;;  %s113_s1 = inlined_call_operand.hbm [shape: f32[16,128], index: 1, kind: output, shape index: {}, may-alias: {0,1}]  }
   0x1   :  { %7 = vsyncpa [#allocation4], 0  ;;  %s92_s6 = smov [#allocation2]  }
   0x2   :  { %s13_s7 = sshll.u32 %s92_s6, 4  ;;  %s14_s7 = int_to_ptr.vmem [resolvable:$true] %s13_s7 }
   0x3   :  { %s56_s8 = scalar_lea.vmem %s14_s7, 256  ;;  %p61_p1 = scmp.lt.s32.totalorder %s14_s7, %s14_s7 }
   0x4   :  { %p57_p0 = scmp.ne.s32.totalorder %s14_s7, %s56_s8  ;;  %p62_p2 = scmp.lt.s32.totalorder %s56_s8, %s56_s8 }
   0x6   :  { %p63_p3 = por %p62_p2, %p61_p1 }
   0x8   :  { %p64_p4 = pnand %p63_p3, %p57_p0 }
   0xa   :  { %67 = shalt.err (!%p64_p4)
}
   0xb   :  { %s93_s9 = smov 128   ;;  %s94_s10 = smov 8  }
   0xc   :  { %19 = dma.hbm_to_vmem [thread:$0]  %s112_s0, 256, %s14_s7, [#allocation3], %s93_s9, %s93_s9, %s94_s10  }
   0xd   :  { %88 = dma.done.wait [#allocation3], 256  }
   0xe   :  { %89 = vsyncadd [#allocation3], 4294967040  ;;  %s95_s13 = smov [#allocation5]   ;;  %v23_v0 = vld [vmem:[#allocation2] sm:$0xff]  ;;  %v24_v1 = vld [vmem:[#allocation2 + $0x8] sm:$0xff] }
   0xf   :  { %s32_s14 = sshll.u32 %s95_s13, 4  ;;  %25 = vst [vmem:[#allocation5] sm:$0xff] %v23_v0  ;;  %26 = vst [vmem:[#allocation5 + $0x8] sm:$0xff] %v24_v1  ;;  %s33_s14 = int_to_ptr.vmem [resolvable:$true] %s32_s14 }
  0x10   :  { %s68_s15 = scalar_lea.vmem %s33_s14, 256  ;;  %p73_p6 = scmp.lt.s32.totalorder %s33_s14, %s33_s14 }
  0x11   :  { %p69_p5 = scmp.ne.s32.totalorder %s33_s14, %s68_s15  ;;  %p74_p7 = scmp.lt.s32.totalorder %s68_s15, %s68_s15 }
  0x13   :  { %p75_p8 = por %p74_p7, %p73_p6 }
  0x15   :  { %p76_p9 = pnand %p75_p8, %p69_p5 }
  0x17   :  { %79 = shalt.err (!%p76_p9)
}
  0x18   :  { %38 = dma.vmem_to_hbm [thread:$0]  %s33_s14, 256, %s113_s1, [#allocation4], %s93_s9, %s93_s9, %s94_s10  }
  0x19   :  { %90 = dma.done.wait [#allocation4], 256  }
  0x1a   :  { %91 = vsyncadd [#allocation4], 4294967040 }
  0x1b   :  { %42 = vsyncpa [#allocation3], 1 }
  0x1c   :  { %43 = vsyncpa [#allocation4], 1 }

</bundles_post_ra>
